<compile_context>
chip_gen: v7x
topology: tpu7x:2x2x1
jax: 0.10.0
libtpu: 0.0.40
codegen_flags: <defaults>
</compile_context>

<pallas_src>
import functools

import jax
import jax.numpy as jnp
from jax.experimental import pallas as pl
from jax.experimental.pallas import tpu as pltpu


def _round_up(v, m):
    return ((v + m - 1) // m) * m


# ----------------------------------------------------------------------------
# Kernels
# ----------------------------------------------------------------------------
def _nbl_kernel_f32_out(x_ref, w_ref, invx_ref, invw_ref, o_ref, *, precision):
    """f32 output: accumulate directly in the (k-invariant, resident) output block."""
    k = pl.program_id(2)

    @pl.when(k == 0)
    def _init():
        o_ref[...] = jnp.zeros_like(o_ref)

    o_ref[...] += jnp.dot(
        x_ref[...], w_ref[...],
        preferred_element_type=jnp.float32, precision=precision)

    @pl.when(k == pl.num_programs(2) - 1)
    def _finalize():
        # (tm,1) row scale and (1,tn) column scale -> exact fold of both norms.
        o_ref[...] = (o_ref[...] * invx_ref[...]) * invw_ref[...]


def _nbl_kernel_acc(x_ref, w_ref, invx_ref, invw_ref, o_ref, acc_ref, *, precision):
    """Non-f32 output (e.g. bf16): f32 VMEM scratch accumulator."""
    k = pl.program_id(2)

    @pl.when(k == 0)
    def _init():
        acc_ref[...] = jnp.zeros_like(acc_ref)

    acc_ref[...] += jnp.dot(
        x_ref[...], w_ref[...],
        preferred_element_type=jnp.float32, precision=precision)

    @pl.when(k == pl.num_programs(2) - 1)
    def _finalize():
        o_ref[...] = ((acc_ref[...] * invx_ref[...]) * invw_ref[...]).astype(o_ref.dtype)


# ----------------------------------------------------------------------------
# Wrapper
# ----------------------------------------------------------------------------
def _default_tiles(itemsize):
    """Per-generation default tiles that reach the MXU roofline."""
    try:
        kind = jax.devices()[0].device_kind.lower()
    except Exception:  # pragma: no cover - defensive
        kind = ""
    if "v6" in kind:
        # v6e: needs ~680 FLOP/byte (bf16) to be MXU-bound; ~22 MiB working set.
        return (1024, 2048, 512) if itemsize <= 2 else (1024, 1024, 512)
    # v5e (~240 FLOP/byte) and v7x (~310 per TC, but only 64 MiB VMEM/TC):
    # 512x1024 output tile, ~10-12 MiB working set.
    return (512, 1024, 512)


@functools.partial(jax.jit, static_argnames=("tm", "tn", "tk", "precision"))
def norm_both_linear(x, weight, *, tm=None, tn=None, tk=None, precision=None):
    """matmul(normalize(x, dim=-1), normalize(weight, dim=0)).

    x: (M, in_dim), weight: (in_dim, out_dim) -> (M, out_dim), dtype of x.
    """
    M, K = x.shape
    K_w, N = weight.shape
    assert K == K_w, "in_dim mismatch"

    out_dtype = x.dtype
    itemsize = jnp.dtype(x.dtype).itemsize

    dtm, dtn, dtk = _default_tiles(itemsize)
    tm = dtm if tm is None else tm
    tn = dtn if tn is None else tn
    tk = dtk if tk is None else tk

    # Clamp tiles to the (alignment-rounded) problem size; second-minor
    # alignment is packing-dependent (8 rows f32, 16 rows bf16, 32 rows int8).
    sub = 8 * max(1, 4 // itemsize)
    tm = min(tm, _round_up(M, sub))
    tn = min(tn, _round_up(N, 128))
    tk = min(tk, _round_up(K, 128))

    # --- Normalization prologue (one cheap HBM pass, exact F.normalize math) ---
    eps = jnp.float32(1e-12)
    xf = x.astype(jnp.float32)
    wf = weight.astype(jnp.float32)
    inv_x = 1.0 / jnp.maximum(
        jnp.sqrt(jnp.sum(xf * xf, axis=-1, keepdims=True)), eps)      # (M, 1)
    inv_w = 1.0 / jnp.maximum(
        jnp.sqrt(jnp.sum(wf * wf, axis=0, keepdims=True)), eps)       # (1, N)

    # Pad ONLY the contraction dim: zero K-tail is required for a correct
    # matmul; ragged M/N tail blocks only produce masked-out output rows/cols.
    Kp = _round_up(K, tk)
    if Kp != K:
        x = jnp.pad(x, ((0, 0), (0, Kp - K)))
        weight = jnp.pad(weight, ((0, Kp - K), (0, 0)))

    grid = (pl.cdiv(M, tm), pl.cdiv(N, tn), Kp // tk)

    use_acc = out_dtype != jnp.float32
    kernel = _nbl_kernel_acc if use_acc else _nbl_kernel_f32_out
    kernel = functools.partial(kernel, precision=precision)
    scratch = [pltpu.VMEM((tm, tn), jnp.float32)] if use_acc else []

    # VMEM budget: double-buffered x/w/out blocks (+ f32 acc if present).
    vmem_needed = (2 * (tm * tk + tk * tn) * itemsize
                   + 2 * tm * tn * itemsize
                   + (tm * tn * 4 if use_acc else 0)
                   + 8 * (tm + tn))
    vmem_limit = int(min(max(vmem_needed * 3 // 2, 32 << 20), 48 << 20))

    cost = pl.CostEstimate(
        flops=2 * M * N * K,
        transcendentals=0,
        bytes_accessed=(M * K + K * N + M * N) * itemsize,
    )

    out = pl.pallas_call(
        kernel,
        out_shape=jax.ShapeDtypeStruct((M, N), out_dtype),
        grid_spec=pltpu.PrefetchScalarGridSpec(
            num_scalar_prefetch=0,
            grid=grid,
            in_specs=[
                pl.BlockSpec((tm, tk), lambda i, j, k: (i, k)),   # x
                pl.BlockSpec((tk, tn), lambda i, j, k: (k, j)),   # weight
                pl.BlockSpec((tm, 1), lambda i, j, k: (i, 0)),    # inv_x (epilogue)
                pl.BlockSpec((1, tn), lambda i, j, k: (0, j)),    # inv_w (epilogue)
            ],
            out_specs=pl.BlockSpec((tm, tn), lambda i, j, k: (i, j)),
            scratch_shapes=scratch,
        ),
        compiler_params=pltpu.CompilerParams(
            dimension_semantics=("parallel", "parallel", "arbitrary"),
            vmem_limit_bytes=vmem_limit,
        ),
        cost_estimate=cost,
    )(x, weight, inv_x, inv_w)

    return out


# ----------------------------------------------------------------------------
# Init + reference
# ----------------------------------------------------------------------------
def xavier_uniform_relu(key, in_dim, out_dim, dtype=jnp.float32):
    # nn.init.xavier_uniform_(w, gain=calculate_gain('relu')):
    #   gain = sqrt(2); bound = gain * sqrt(6 / (fan_in + fan_out))
    bound = (2.0 ** 0.5) * (6.0 / (in_dim + out_dim)) ** 0.5
    return jax.random.uniform(
        key, (in_dim, out_dim), dtype=dtype, minval=-bound, maxval=bound)


def norm_both_linear_ref(x, weight):
    eps = 1e-12
    xn = x / jnp.maximum(jnp.sqrt(jnp.sum(x * x, axis=-1, keepdims=True)), eps)
    wn = weight / jnp.maximum(
        jnp.sqrt(jnp.sum(weight * weight, axis=0, keepdims=True)), eps)
    return jnp.matmul(xn, wn)


if __name__ == "__main__":
    key = jax.random.PRNGKey(0)
    k1, k2, k3, k4, k5, k6 = jax.random.split(key, 6)

    # 1) Small shapes consistent with the module.
    batch, in_dim, out_dim = 8, 32, 16
    x = jax.random.normal(k1, (batch, in_dim), dtype=jnp.float32)
    w = xavier_uniform_relu(k2, in_dim, out_dim)
    out = jax.block_until_ready(norm_both_linear(x, w))
    ref = norm_both_linear_ref(x, w)
    assert out.shape == (batch, out_dim)
    assert jnp.allclose(out, ref, atol=1e-5, rtol=1e-4), "mismatch (small shapes)"

    # 2) Ragged M/N tiles + K padding + multiple K blocks (f32, direct-o_ref path).
    Mb, Kb, Nb = 300, 700, 200
    x2 = jax.random.normal(k3, (Mb, Kb), dtype=jnp.float32)
    w2 = xavier_uniform_relu(k4, Kb, Nb)
    out2 = jax.block_until_ready(norm_both_linear(x2, w2))
    ref2 = norm_both_linear_ref(x2, w2)
    assert out2.shape == (Mb, Nb)
    assert jnp.allclose(out2, ref2, atol=1e-5, rtol=1e-4), "mismatch (tiled shapes)"

    # 3) bf16 fast path (f32 scratch-accumulator kernel variant).
    Mc, Kc, Nc = 128, 256, 256
    x3 = jax.random.normal(k5, (Mc, Kc), dtype=jnp.float32).astype(jnp.bfloat16)
    w3 = xavier_uniform_relu(k6, Kc, Nc).astype(jnp.bfloat16)
    out3 = jax.block_until_ready(norm_both_linear(x3, w3))
    ref3 = norm_both_linear_ref(x3.astype(jnp.float32), w3.astype(jnp.float32))
    assert out3.dtype == jnp.bfloat16 and out3.shape == (Mc, Nc)
    assert jnp.allclose(out3.astype(jnp.float32), ref3, atol=2e-2, rtol=2e-2), \
        "mismatch (bf16)"

    print("KERNEL_OK")
</pallas_src>

<mosaic_0001>
module attributes {stable_mosaic.version = 11 : i64} {
  func.func @_nbl_kernel_f32_out(%arg0: i32, %arg1: i32, %arg2: i32, %arg3: memref<8x128xf32, #tpu.memory_space<vmem>>, %arg4: memref<128x128xf32, #tpu.memory_space<vmem>>, %arg5: memref<8x1xf32, #tpu.memory_space<vmem>>, %arg6: memref<1x128xf32, #tpu.memory_space<vmem>>, %arg7: memref<8x128xf32, #tpu.memory_space<vmem>>) attributes {dimension_semantics = [#tpu.dimension_semantics<parallel>, #tpu.dimension_semantics<parallel>, #tpu.dimension_semantics<arbitrary>], iteration_bounds = array<i64: 1, 1, 1>, scalar_prefetch = 0 : i64, scratch_operands = 0 : i64, tpu.core_type = #tpu.core_type<tc>, window_params = [{transform_indices = @transform_0, window_bounds = array<i64: 8, 128>}, {transform_indices = @transform_1, window_bounds = array<i64: 128, 128>}, {transform_indices = @transform_2, window_bounds = array<i64: 8, 1>}, {transform_indices = @transform_3, window_bounds = array<i64: 1, 128>}, {transform_indices = @transform_4, window_bounds = array<i64: 8, 128>}]} {
    %c0_i32 = arith.constant 0 : i32
    %0 = arith.cmpi eq, %arg2, %c0_i32 : i32
    %1 = arith.extui %0 : i1 to i32
    %c0_i32_0 = arith.constant 0 : i32
    %2 = arith.cmpi ne, %1, %c0_i32_0 : i32
    scf.if %2 {
      %cst_10 = arith.constant 0.000000e+00 : f32
      %12 = vector.broadcast %cst_10 : f32 to vector<8x128xf32>
      %c0_11 = arith.constant 0 : index
      %c0_12 = arith.constant 0 : index
      %13 = vector.load %arg7[%c0_11, %c0_12] : memref<8x128xf32, #tpu.memory_space<vmem>>, vector<8x128xf32>
      tpu.vector_store %arg7[%c0_11, %c0_12], %12 {strides = array<i32>} : memref<8x128xf32, #tpu.memory_space<vmem>>, vector<8x128xf32>,
    } else {
    }
    %c0 = arith.constant 0 : index
    %c0_1 = arith.constant 0 : index
    %3 = vector.load %arg7[%c0, %c0_1] : memref<8x128xf32, #tpu.memory_space<vmem>>, vector<8x128xf32>
    %c0_2 = arith.constant 0 : index
    %c0_3 = arith.constant 0 : index
    %4 = vector.load %arg3[%c0_2, %c0_3] : memref<8x128xf32, #tpu.memory_space<vmem>>, vector<8x128xf32>
    %c0_4 = arith.constant 0 : index
    %c0_5 = arith.constant 0 : index
    %5 = vector.load %arg4[%c0_4, %c0_5] : memref<128x128xf32, #tpu.memory_space<vmem>>, vector<128x128xf32>
    %cst = arith.constant dense<0.000000e+00> : vector<8x128xf32>
    %6 = tpu.matmul %4, %5, %cst {dimension_numbers = #tpu.dot_dimension_numbers<[1], [0], [0], [1], [0, 0, 1, 1], [], []>} : vector<8x128xf32>, vector<128x128xf32>, vector<8x128xf32> -> vector<8x128xf32>
    %7 = arith.addf %3, %6 : vector<8x128xf32>
    %c0_6 = arith.constant 0 : index
    %c0_7 = arith.constant 0 : index
    %8 = vector.load %arg7[%c0_6, %c0_7] : memref<8x128xf32, #tpu.memory_space<vmem>>, vector<8x128xf32>
    tpu.vector_store %arg7[%c0_6, %c0_7], %7 {strides = array<i32>} : memref<8x128xf32, #tpu.memory_space<vmem>>, vector<8x128xf32>,
    %c0_i32_8 = arith.constant 0 : i32
    %9 = arith.cmpi eq, %arg2, %c0_i32_8 : i32
    %10 = arith.extui %9 : i1 to i32
    %c0_i32_9 = arith.constant 0 : i32
    %11 = arith.cmpi ne, %10, %c0_i32_9 : i32
    scf.if %11 {
      %c0_10 = arith.constant 0 : index
      %c0_11 = arith.constant 0 : index
      %12 = vector.load %arg7[%c0_10, %c0_11] : memref<8x128xf32, #tpu.memory_space<vmem>>, vector<8x128xf32>
      %c0_12 = arith.constant 0 : index
      %c0_13 = arith.constant 0 : index
      %13 = vector.load %arg5[%c0_12, %c0_13] : memref<8x1xf32, #tpu.memory_space<vmem>>, vector<8x1xf32>
      %14 = vector.broadcast %13 : vector<8x1xf32> to vector<8x128xf32>
      %15 = arith.mulf %12, %14 : vector<8x128xf32>
      %c0_14 = arith.constant 0 : index
      %c0_15 = arith.constant 0 : index
      %16 = vector.load %arg6[%c0_14, %c0_15] : memref<1x128xf32, #tpu.memory_space<vmem>>, vector<1x128xf32>
      %17 = vector.broadcast %16 : vector<1x128xf32> to vector<8x128xf32>
      %18 = arith.mulf %15, %17 : vector<8x128xf32>
      %c0_16 = arith.constant 0 : index
      %c0_17 = arith.constant 0 : index
      %19 = vector.load %arg7[%c0_16, %c0_17] : memref<8x128xf32, #tpu.memory_space<vmem>>, vector<8x128xf32>
      tpu.vector_store %arg7[%c0_16, %c0_17], %18 {strides = array<i32>} : memref<8x128xf32, #tpu.memory_space<vmem>>, vector<8x128xf32>,
    } else {
    }
    return
  }
  func.func @transform_0(%arg0: i32, %arg1: i32, %arg2: i32) -> (i32, i32) {
    %c0_i32 = arith.constant 0 : i32
    return %arg0, %arg2 : i32, i32
  }
  func.func @transform_1(%arg0: i32, %arg1: i32, %arg2: i32) -> (i32, i32) {
    %c0_i32 = arith.constant 0 : i32
    return %arg2, %arg1 : i32, i32
  }
  func.func @transform_2(%arg0: i32, %arg1: i32, %arg2: i32) -> (i32, i32) {
    %c0_i32 = arith.constant 0 : i32
    %c0_i32_0 = arith.constant 0 : i32
    return %arg0, %c0_i32 : i32, i32
  }
  func.func @transform_3(%arg0: i32, %arg1: i32, %arg2: i32) -> (i32, i32) {
    %c0_i32 = arith.constant 0 : i32
    %c0_i32_0 = arith.constant 0 : i32
    return %c0_i32, %arg1 : i32, i32
  }
  func.func @transform_4(%arg0: i32, %arg1: i32, %arg2: i32) -> (i32, i32) {
    %c0_i32 = arith.constant 0 : i32
    return %arg0, %arg1 : i32, i32
  }
}

</mosaic_0001>

<bundles_post_ra>
// kernel: norm_both_linear.1
= control target key start
LH: loop header
LB: loop body
LE: loop exit
PB: predicated region body
PF: predicated region fallthrough
CT: control target
= control target key end

     0   :  { %v254_v3 = vmov 0.0|0.0   ;;  %vm255_vm0 = vmmov 0   ;;  %v256_v6 = vmov 0.0   ;;  %v257_v7 = vmov 0   ;;  %s353_s0 = inlined_call_operand.vmem [shape: f32[8,128], index: 0, kind: input, shape index: {}]   ;;  %s354_s1 = inlined_call_operand.vmem [shape: f32[128,16], index: 1, kind: input, shape index: {}]   ;;  %s355_s2 = inlined_call_operand.vmem [shape: f32[8,1], index: 2, kind: input, shape index: {}]   ;;  %s356_s3 = inlined_call_operand.vmem [shape: f32[1,16], index: 3, kind: input, shape index: {}]   ;;  %s357_s4 = inlined_call_operand.hbm [shape: f32[8,16], index: 4, kind: output, shape index: {}]  }
   0x1   :  { %v25_v0 = vld [vmem:[%s354_s1] sm:$0xff]  ;;  %v26_v1 = vld [vmem:[%s354_s1 + $0x8] sm:$0xff]  ;;  %v27_v2 = vld [vmem:[%s354_s1 + $0x10] sm:$0xff]  ;;  %200 = vmatprep.subr.bf16.mxu0 %v254_v3  ;;  %197 = vmatprep.mubr.msk.f32.mxu0 %vm255_vm0, %v256_v6 }
   0x2   :  { %v201_v4 = vpack.c.bf16 %v26_v1, %v25_v0  ;;  %v28_v5 = vld [vmem:[%s354_s1 + $0x18] sm:$0xff]  ;;  %229 = vset.pattern.permute.xlu0 %v257_v7  ;;  %v29_v9 = vld [vmem:[%s354_s1 + $0x20] sm:$0xff]  ;;  %v30_v10 = vld [vmem:[%s354_s1 + $0x28] sm:$0xff] }
   0x3   :  { %v204_v8 = vpack.c.bf16 %v28_v5, %v27_v2  ;;  %v117_v11 = vld [vmem:[%s355_s2] sm:$0xff] }
   0x4   :  { %202 = vmatpush3.bf16.msra.mxu0 %v201_v4  ;;  %120 = vperm.xlu0 %229, %v117_v11  }
   0x5   :  { %203 = vmatprep.subr.bf16.mxu0 %v254_v3 }
   0x6   :  { %9 = vsyncpa [#allocation3], 0  ;;  %v207_v12 = vpack.c.bf16 %v30_v10, %v29_v9  ;;  %v31_v13 = vld [vmem:[%s354_s1 + $0x30] sm:$0xff]  ;;  %v32_v14 = vld [vmem:[%s354_s1 + $0x38] sm:$0xff]  ;;  %s258_s26 = smov [#allocation2]  }
   0x7   :  { %v210_v15 = vpack.c.bf16 %v32_v14, %v31_v13  ;;  %v33_v16 = vld [vmem:[%s354_s1 + $0x40] sm:$0xff]  ;;  %v34_v17 = vld [vmem:[%s354_s1 + $0x48] sm:$0xff]  ;;  %v35_v19 = vld [vmem:[%s354_s1 + $0x50] sm:$0xff]  ;;  %s139_s27 = sshll.u32 %s258_s26, 4  ;;  %s140_s27 = int_to_ptr.vmem [resolvable:$true] %s139_s27 }
   0x8   :  { %205 = vmatpush3.bf16.msra.mxu0 %v204_v8  ;;  %v213_v18 = vpack.c.bf16 %v34_v17, %v33_v16  ;;  %v36_v20 = vld [vmem:[%s354_s1 + $0x58] sm:$0xff]  ;;  %v37_v22 = vld [vmem:[%s354_s1 + $0x60] sm:$0xff]  ;;  %v38_v23 = vld [vmem:[%s354_s1 + $0x68] sm:$0xff]  ;;  %p235_p1 = scmp.lt.s32.totalorder %s140_s27, %s140_s27 }
   0x9   :  { %206 = vmatprep.subr.bf16.mxu0 %v254_v3  ;;  %v216_v21 = vpack.c.bf16 %v36_v20, %v35_v19  ;;  %v219_v24 = vpack.c.bf16 %v38_v23, %v37_v22  ;;  %v39_v25 = vld [vmem:[%s354_s1 + $0x70] sm:$0xff]  ;;  %v40_v26 = vld [vmem:[%s354_s1 + $0x78] sm:$0xff]  ;;  %v24_v28 = vld [vmem:[%s353_s0] sm:$0xff]  ;;  %s230_s1 = scalar_lea.vmem %s140_s27, 128 }
   0xa   :  { %v222_v27 = vpack.c.bf16 %v40_v26, %v39_v25  ;;  %v147_v32 = vld [vmem:[%s356_s3] ss:$0 sm:$0xff]  ;;  %p231_p0 = scmp.ne.s32.totalorder %s140_s27, %s230_s1  ;;  %p236_p2 = scmp.lt.s32.totalorder %s230_s1, %s230_s1 }
   0xc   :  { %208 = vmatpush3.bf16.msra.mxu0 %v207_v12  ;;  %p237_p3 = por %p236_p2, %p235_p1 }
   0xd   :  { %209 = vmatprep.subr.bf16.mxu0 %v254_v3 }
   0xe   :  { %p238_p4 = pnand %p237_p3, %p231_p0 }
  0x10   :  { %211 = vmatpush3.bf16.msra.mxu0 %v210_v15 }
  0x11   :  { %212 = vmatprep.subr.bf16.mxu0 %v254_v3 }
  0x14   :  { %214 = vmatpush3.bf16.msra.mxu0 %v213_v18 }
  0x15   :  { %215 = vmatprep.subr.bf16.mxu0 %v254_v3 }
  0x18   :  { %217 = vmatpush3.bf16.msra.mxu0 %v216_v21 }
  0x19   :  { %218 = vmatprep.subr.bf16.mxu0 %v254_v3 }
  0x1c   :  { %220 = vmatpush3.bf16.msra.mxu0 %v219_v24 }
  0x1d   :  { %221 = vmatprep.subr.bf16.mxu0 %v254_v3 }
  0x20   :  { %223 = vmatpush3.bf16.msra.mxu0 %v222_v27 }
  0x23   :  { %198 = vmatmul.mubr.f32.vlgmr.msra.gmra.mrb[0].mxu0 %v24_v28 }
  0x83   :  { %v121_v30 = vpop.permute.xlu0 %120 }
  0xf6   :  { %v107_v29 = vpop.f32.mrb[0].mxu0 }
  0xf7   :  { %v199_v31 = vpop.f32.mrb[1].mxu0  ;;  %v123_v33 = vmul.f32 %v121_v30, %v107_v29 }
  0xf9   :  { %v131_v34 = vmul.f32 %v147_v32, %v123_v33 }
  0xfb   :  { %132 = vst [vmem:[#allocation2] sm:$0xff] %v131_v34 }
  0xfc   :  { %241 = shalt.err (!%p238_p4)
}
  0xfd   :  { %s242_s29 = scalar_lea.hbm %s357_s4, 128 }
  0xfe   :  { %p243_p5 = scmp.ne.s32.totalorder %s357_s4, %s242_s29  ;;  %p246_p6 = scmp.lt.u32.totalorder %s242_s29, %s357_s4 }
 0x100   :  { %p248_p7 = pnand %p246_p6, %p243_p5 }
 0x102   :  { %251 = shalt.err (!%p248_p7)
}
 0x103   :  { %142 = dma.vmem_to_hbm [thread:$0]  %s140_s27, 128, %s357_s4, [#allocation3]  }
 0x104   :  { %252 = dma.done.wait [#allocation3], 128  }
 0x105   :  { %253 = vsyncadd [#allocation3], 4294967168 }
 0x106   :  { %146 = vsyncpa [#allocation3], 1 }

</bundles_post_ra>
